<compile_context>
chip_gen: v6e
topology: v6e:2x2x1
jax: 0.10.0
libtpu: 0.0.40
codegen_flags: <defaults>
</compile_context>

<pallas_src>
import functools

import jax
import jax.numpy as jnp
import numpy as np
from jax.experimental import pallas as pl
from jax.experimental.pallas import tpu as pltpu


# ----------------------------- one-time weight prep -----------------------------

def _beta_stats_kernel(te_ref, we_ref, c_ref, m_sc, s_sc, *, v_total):
    """Online per-topic log-normalizer over the vocabulary axis (prep-time only)."""
    i = pl.program_id(0)
    n_vt = pl.num_programs(0)
    vt = we_ref.shape[0]

    @pl.when(i == 0)
    def _init():
        m_sc[...] = jnp.full_like(m_sc, -jnp.inf)
        s_sc[...] = jnp.zeros_like(s_sc)

    # score tile [K, vt]: contract on E for both operands (no in-kernel transpose).
    s_tile = jax.lax.dot_general(
        te_ref[...], we_ref[...],
        dimension_numbers=(((1,), (1,)), ((), ())),
        preferred_element_type=jnp.float32)

    # Mask padded vocabulary columns.  This kernel is one-time prep (not the per-call
    # hot path), so the unconditional mask is irrelevant for throughput.
    col = jax.lax.broadcasted_iota(jnp.int32, (1, vt), 1) + i * vt
    s_tile = jnp.where(col < v_total, s_tile, -jnp.inf)

    m_prev = m_sc[...]
    m_new = jnp.maximum(m_prev, jnp.max(s_tile, axis=1, keepdims=True))
    s_sc[...] = (s_sc[...] * jnp.exp(m_prev - m_new)
                 + jnp.sum(jnp.exp(s_tile - m_new), axis=1, keepdims=True))
    m_sc[...] = m_new

    @pl.when(i == n_vt - 1)
    def _finalize():
        # beta[k, v] = exp(score[k, v] - c[k])
        c_ref[...] = m_sc[...] + jnp.log(s_sc[...])


def _beta_emit_kernel(c_ref, te_ref, we_ref, beta_ref, *, v_total):
    """Emit normalized beta tiles as bf16; zero the padded vocabulary columns."""
    i = pl.program_id(0)
    vt = we_ref.shape[0]
    s_tile = jax.lax.dot_general(
        te_ref[...], we_ref[...],
        dimension_numbers=(((1,), (1,)), ((), ())),
        preferred_element_type=jnp.float32)                    # [K, vt]
    b_tile = jnp.exp(s_tile - c_ref[...])
    col = jax.lax.broadcasted_iota(jnp.int32, (1, vt), 1) + i * vt
    b_tile = jnp.where(col < v_total, b_tile, 0.0)
    beta_ref[...] = b_tile.astype(beta_ref.dtype)


def prepare_decoder(params, *, vt=8192):
    """One-time preparation: transposed Linear weight, padded bf16 beta (topic-word
    matrix).  Call once per weight set; reuse the result for every forward call."""
    K, E = params["topic_embedding"].shape
    V, _ = params["word_embedding"].shape

    v_aligned = pl.cdiv(V, 128) * 128
    vt = max(128, min((int(vt) // 128) * 128, v_aligned))
    n_vt = pl.cdiv(V, vt)
    v_pad = n_vt * vt

    # f32 embeddings for the prep matmuls (one-time cost, maximum accuracy);
    # the *stored* beta is bf16 to halve the per-call HBM read.
    te = params["topic_embedding"].astype(jnp.float32)                       # [K, E]
    we = params["word_embedding"].astype(jnp.float32)                        # [V, E]
    if v_pad != V:
        we = jnp.pad(we, ((0, v_pad - V), (0, 0)))

    full = lambda shape: pl.BlockSpec(shape, lambda i: (0, 0))
    we_spec = pl.BlockSpec((vt, E), lambda i: (i, 0))

    # pass 1: per-topic log-normalizer over all V tiles.
    c = pl.pallas_call(
        functools.partial(_beta_stats_kernel, v_total=V),
        out_shape=jax.ShapeDtypeStruct((K, 1), jnp.float32),
        grid_spec=pltpu.PrefetchScalarGridSpec(
            num_scalar_prefetch=0, grid=(n_vt,),
            in_specs=[full((K, E)), we_spec],
            out_specs=full((K, 1)),
            scratch_shapes=[pltpu.VMEM((K, 1), jnp.float32),
                            pltpu.VMEM((K, 1), jnp.float32)]),
        compiler_params=pltpu.CompilerParams(
            dimension_semantics=("arbitrary",)),
    )(te, we)

    # pass 2: normalized beta, bf16 [K, v_pad], padded columns exactly zero.
    beta = pl.pallas_call(
        functools.partial(_beta_emit_kernel, v_total=V),
        out_shape=jax.ShapeDtypeStruct((K, v_pad), jnp.bfloat16),
        grid_spec=pltpu.PrefetchScalarGridSpec(
            num_scalar_prefetch=0, grid=(n_vt,),
            in_specs=[full((K, 1)), full((K, E)), we_spec],
            out_specs=pl.BlockSpec((K, vt), lambda i: (0, i))),
        compiler_params=pltpu.CompilerParams(
            dimension_semantics=("parallel",)),
    )(c, te, we)

    return {
        "beta": beta,                                                       # [K, v_pad] bf16
        "wt": params["transform_theta_w"].astype(jnp.float32).T,           # [K, K]
        "b": params["transform_theta_b"].astype(jnp.float32).reshape(1, K),
        "V": V, "vt": vt, "n_vt": n_vt,
        "zPrivate_dim": params["zPrivate_dim"],
        "zShared_dim": params["zShared_dim"],
    }


# ----------------------------- per-call forward kernel -----------------------------

def _forward_kernel(z_ref, wt_ref, b_ref, beta_ref, out_ref):
    # theta = softmax(z @ W^T + b): tiny [B, K], recomputed per V tile (cheap, hidden
    # under the beta DMA; safe under megacore sharding).  Exact division, not approx.
    logits = jnp.dot(z_ref[...], wt_ref[...],
                     preferred_element_type=jnp.float32) + b_ref[...]
    logits = logits - jnp.max(logits, axis=1, keepdims=True)
    e = jnp.exp(logits)
    theta = e / jnp.sum(e, axis=1, keepdims=True)
    # out_tile = theta @ beta_tile   (bf16 operands, f32 MXU accumulation).
    out_ref[...] = jnp.dot(theta.astype(beta_ref.dtype), beta_ref[...],
                           preferred_element_type=jnp.float32)


def decoder_forward_pallas(zPrivate, zShared, prepared):
    """Mirrors DecoderNetworkFromGsm.forward: returns (prior_mean_private,
    prior_var_private, prior_mean_shared, prior_var_shared, reconstruct_word_dist)."""
    z = jnp.concatenate([zPrivate, zShared], axis=-1).astype(jnp.float32)   # [B, K]
    B, K = z.shape
    V, vt, n_vt = prepared["V"], prepared["vt"], prepared["n_vt"]

    full = lambda shape: pl.BlockSpec(shape, lambda i: (0, 0))
    recon = pl.pallas_call(
        _forward_kernel,
        out_shape=jax.ShapeDtypeStruct((B, V), jnp.float32),   # un-padded output
        grid_spec=pltpu.PrefetchScalarGridSpec(
            num_scalar_prefetch=0, grid=(n_vt,),
            in_specs=[full((B, K)), full((K, K)), full((1, K)),
                      pl.BlockSpec((K, vt), lambda i: (0, i))],
            out_specs=pl.BlockSpec((B, vt), lambda i: (0, i))),
        compiler_params=pltpu.CompilerParams(
            dimension_semantics=("parallel",)),
    )(z, prepared["wt"], prepared["b"], prepared["beta"])

    zP, zS = prepared["zPrivate_dim"], prepared["zShared_dim"]
    return (jnp.zeros((zP,), jnp.float32), jnp.ones((zP,), jnp.float32),
            jnp.zeros((zS,), jnp.float32), jnp.ones((zS,), jnp.float32),
            recon)


# ----------------------------- params / reference / demo -----------------------------

def embedding_init(key, dim1, dim2, constant=1.0):
    bound = constant * np.sqrt(6.0 / (dim1 + dim2))
    return jax.random.uniform(key, (dim1, dim2), jnp.float32, -bound, bound)


def make_params(key, input_size, zPrivate_dim=15, zShared_dim=5, embed_dim=100):
    K = zPrivate_dim + zShared_dim
    k1, k2, k3, k4 = jax.random.split(key, 4)
    lb = 1.0 / np.sqrt(K)                       # nn.Linear default init
    return {
        "topic_embedding": embedding_init(k1, K, embed_dim),
        "word_embedding": embedding_init(k2, input_size, embed_dim),
        "transform_theta_w": jax.random.uniform(k3, (K, K), jnp.float32, -lb, lb),
        "transform_theta_b": jax.random.uniform(k4, (1, K), jnp.float32, -lb, lb),
        "zPrivate_dim": zPrivate_dim,
        "zShared_dim": zShared_dim,
    }


def _reference_forward(zPrivate, zShared, params):
    z = jnp.concatenate([zPrivate, zShared], axis=-1).astype(jnp.float32)
    theta = jax.nn.softmax(
        z @ params["transform_theta_w"].astype(jnp.float32).T
        + params["transform_theta_b"].astype(jnp.float32), axis=1)
    beta = jax.nn.softmax(
        params["topic_embedding"].astype(jnp.float32)
        @ params["word_embedding"].astype(jnp.float32).T, axis=1)
    return theta @ beta


if __name__ == "__main__":
    key = jax.random.PRNGKey(0)
    kp, kz1, kz2 = jax.random.split(key, 3)

    B = 8
    input_size = 300            # vocabulary V (deliberately not a multiple of 128)
    zPrivate_dim, zShared_dim = 15, 5

    params = make_params(kp, input_size, zPrivate_dim, zShared_dim)
    zPrivate = jax.random.normal(kz1, (B, zPrivate_dim), jnp.float32)
    zShared = jax.random.normal(kz2, (B, zShared_dim), jnp.float32)

    # One-time weight prep (beta precompute etc.).  vt=128 -> 3 V tiles with a
    # partial boundary tile, exercising masking + clipped output write-back.
    prepared = prepare_decoder(params, vt=128)
    prepared = jax.block_until_ready(prepared)

    outs = decoder_forward_pallas(zPrivate, zShared, prepared)
    outs = jax.block_until_ready(outs)
    recon = outs[-1]

    # Compare against the pure-f32 PyTorch-equivalent forward.
    ref = _reference_forward(zPrivate, zShared, params)
    np.testing.assert_allclose(np.asarray(recon), np.asarray(ref),
                               rtol=2e-2, atol=1e-5)

    assert recon.shape == (B, input_size)
    assert outs[0].shape == (zPrivate_dim,) and outs[1].shape == (zPrivate_dim,)
    assert outs[2].shape == (zShared_dim,) and outs[3].shape == (zShared_dim,)
    # recon rows are convex combinations of softmax rows -> sum to 1.
    np.testing.assert_allclose(np.asarray(recon).sum(axis=1), np.ones(B), rtol=1e-2)

    print("KERNEL_OK")
</pallas_src>

<mosaic_0001>
module attributes {stable_mosaic.version = 11 : i64} {
  func.func @_beta_stats_kernel(%arg0: i32, %arg1: memref<20x100xf32, #tpu.memory_space<vmem>>, %arg2: memref<128x100xf32, #tpu.memory_space<vmem>>, %arg3: memref<20x1xf32, #tpu.memory_space<vmem>>, %arg4: memref<20x1xf32, #tpu.memory_space<vmem>>, %arg5: memref<20x1xf32, #tpu.memory_space<vmem>>) attributes {dimension_semantics = [#tpu.dimension_semantics<arbitrary>], iteration_bounds = array<i64: 3>, scalar_prefetch = 0 : i64, scratch_operands = 2 : i64, tpu.core_type = #tpu.core_type<tc>, window_params = [{pipeline_mode = #tpu.pipeline_mode<synchronous>, transform_indices = @transform_0, window_bounds = array<i64: 20, 100>}, {transform_indices = @transform_1, window_bounds = array<i64: 128, 100>}, {pipeline_mode = #tpu.pipeline_mode<synchronous>, transform_indices = @transform_2, window_bounds = array<i64: 20, 1>}]} {
    %c0_i32 = arith.constant 0 : i32
    %0 = arith.cmpi eq, %arg0, %c0_i32 : i32
    %1 = arith.extui %0 : i1 to i32
    %c0_i32_0 = arith.constant 0 : i32
    %2 = arith.cmpi ne, %1, %c0_i32_0 : i32
    scf.if %2 {
      %cst_16 = arith.constant 0xFF800000 : f32
      %35 = vector.broadcast %cst_16 : f32 to vector<20x1xf32>
      %c0_17 = arith.constant 0 : index
      %c0_18 = arith.constant 0 : index
      %36 = vector.load %arg4[%c0_17, %c0_18] : memref<20x1xf32, #tpu.memory_space<vmem>>, vector<20x1xf32>
      tpu.vector_store %arg4[%c0_17, %c0_18], %35 {strides = array<i32>} : memref<20x1xf32, #tpu.memory_space<vmem>>, vector<20x1xf32>,
      %cst_19 = arith.constant 0.000000e+00 : f32
      %37 = vector.broadcast %cst_19 : f32 to vector<20x1xf32>
      %c0_20 = arith.constant 0 : index
      %c0_21 = arith.constant 0 : index
      %38 = vector.load %arg5[%c0_20, %c0_21] : memref<20x1xf32, #tpu.memory_space<vmem>>, vector<20x1xf32>
      tpu.vector_store %arg5[%c0_20, %c0_21], %37 {strides = array<i32>} : memref<20x1xf32, #tpu.memory_space<vmem>>, vector<20x1xf32>,
    } else {
    }
    %c0 = arith.constant 0 : index
    %c0_1 = arith.constant 0 : index
    %3 = vector.load %arg1[%c0, %c0_1] : memref<20x100xf32, #tpu.memory_space<vmem>>, vector<20x100xf32>
    %c0_2 = arith.constant 0 : index
    %c0_3 = arith.constant 0 : index
    %4 = vector.load %arg2[%c0_2, %c0_3] : memref<128x100xf32, #tpu.memory_space<vmem>>, vector<128x100xf32>
    %cst = arith.constant dense<0.000000e+00> : vector<20x128xf32>
    %5 = tpu.matmul %3, %4, %cst {dimension_numbers = #tpu.dot_dimension_numbers<[1], [1], [0], [0], [0, 0, 1, 0], [], []>} : vector<20x100xf32>, vector<128x100xf32>, vector<20x128xf32> -> vector<20x128xf32>
    %6 = tpu.iota {dimensions = array<i32: 1>} : vector<1x128xi32>
    %c128_i32 = arith.constant 128 : i32
    %7 = arith.muli %arg0, %c128_i32 : i32
    %8 = vector.broadcast %7 : i32 to vector<1x128xi32>
    %9 = arith.addi %6, %8 : vector<1x128xi32>
    %c300_i32 = arith.constant 300 : i32
    %10 = vector.broadcast %c300_i32 : i32 to vector<1x128xi32>
    %11 = arith.cmpi slt, %9, %10 : vector<1x128xi32>
    %cst_4 = arith.constant 0xFF800000 : f32
    %12 = vector.shape_cast %11 : vector<1x128xi1> to vector<1x128xi1>
    %13 = vector.broadcast %12 : vector<1x128xi1> to vector<20x128xi1>
    %14 = vector.broadcast %cst_4 : f32 to vector<20x128xf32>
    %15 = arith.select %13, %5, %14 : vector<20x128xi1>, vector<20x128xf32>
    %c0_5 = arith.constant 0 : index
    %c0_6 = arith.constant 0 : index
    %16 = vector.load %arg4[%c0_5, %c0_6] : memref<20x1xf32, #tpu.memory_space<vmem>>, vector<20x1xf32>
    %cst_7 = arith.constant dense<0xFF800000> : vector<20xf32>
    %17 = vector.multi_reduction <maximumf>, %15, %cst_7 [1] : vector<20x128xf32> to vector<20xf32>
    %18 = vector.shape_cast %17 : vector<20xf32> to vector<20x1xf32>
    %19 = arith.maximumf %16, %18 : vector<20x1xf32>
    %c0_8 = arith.constant 0 : index
    %c0_9 = arith.constant 0 : index
    %20 = vector.load %arg5[%c0_8, %c0_9] : memref<20x1xf32, #tpu.memory_space<vmem>>, vector<20x1xf32>
    %21 = arith.subf %16, %19 : vector<20x1xf32>
    %22 = math.exp %21 : vector<20x1xf32>
    %23 = arith.mulf %20, %22 : vector<20x1xf32>
    %24 = vector.broadcast %19 : vector<20x1xf32> to vector<20x128xf32>
    %25 = arith.subf %15, %24 : vector<20x128xf32>
    %26 = math.exp %25 : vector<20x128xf32>
    %cst_10 = arith.constant dense<0.000000e+00> : vector<20xf32>
    %27 = vector.multi_reduction <add>, %26, %cst_10 [1] : vector<20x128xf32> to vector<20xf32>
    %28 = vector.shape_cast %27 : vector<20xf32> to vector<20x1xf32>
    %29 = arith.addf %23, %28 : vector<20x1xf32>
    %c0_11 = arith.constant 0 : index
    %c0_12 = arith.constant 0 : index
    %30 = vector.load %arg5[%c0_11, %c0_12] : memref<20x1xf32, #tpu.memory_space<vmem>>, vector<20x1xf32>
    tpu.vector_store %arg5[%c0_11, %c0_12], %29 {strides = array<i32>} : memref<20x1xf32, #tpu.memory_space<vmem>>, vector<20x1xf32>,
    %c0_13 = arith.constant 0 : index
    %c0_14 = arith.constant 0 : index
    %31 = vector.load %arg4[%c0_13, %c0_14] : memref<20x1xf32, #tpu.memory_space<vmem>>, vector<20x1xf32>
    tpu.vector_store %arg4[%c0_13, %c0_14], %19 {strides = array<i32>} : memref<20x1xf32, #tpu.memory_space<vmem>>, vector<20x1xf32>,
    %c2_i32 = arith.constant 2 : i32
    %32 = arith.cmpi eq, %arg0, %c2_i32 : i32
    %33 = arith.extui %32 : i1 to i32
    %c0_i32_15 = arith.constant 0 : i32
    %34 = arith.cmpi ne, %33, %c0_i32_15 : i32
    scf.if %34 {
      %c0_16 = arith.constant 0 : index
      %c0_17 = arith.constant 0 : index
      %35 = vector.load %arg4[%c0_16, %c0_17] : memref<20x1xf32, #tpu.memory_space<vmem>>, vector<20x1xf32>
      %c0_18 = arith.constant 0 : index
      %c0_19 = arith.constant 0 : index
      %36 = vector.load %arg5[%c0_18, %c0_19] : memref<20x1xf32, #tpu.memory_space<vmem>>, vector<20x1xf32>
      %37 = math.log %36 : vector<20x1xf32>
      %38 = arith.addf %35, %37 : vector<20x1xf32>
      %c0_20 = arith.constant 0 : index
      %c0_21 = arith.constant 0 : index
      %39 = vector.load %arg3[%c0_20, %c0_21] : memref<20x1xf32, #tpu.memory_space<vmem>>, vector<20x1xf32>
      tpu.vector_store %arg3[%c0_20, %c0_21], %38 {strides = array<i32>} : memref<20x1xf32, #tpu.memory_space<vmem>>, vector<20x1xf32>,
    } else {
    }
    return
  }
  func.func @transform_0(%arg0: i32) -> (i32, i32) {
    %c0_i32 = arith.constant 0 : i32
    %c0_i32_0 = arith.constant 0 : i32
    %c0_i32_1 = arith.constant 0 : i32
    return %c0_i32, %c0_i32_0 : i32, i32
  }
  func.func @transform_1(%arg0: i32) -> (i32, i32) {
    %c0_i32 = arith.constant 0 : i32
    %c0_i32_0 = arith.constant 0 : i32
    return %arg0, %c0_i32 : i32, i32
  }
  func.func @transform_2(%arg0: i32) -> (i32, i32) {
    %c0_i32 = arith.constant 0 : i32
    %c0_i32_0 = arith.constant 0 : i32
    %c0_i32_1 = arith.constant 0 : i32
    return %c0_i32, %c0_i32_0 : i32, i32
  }
}

</mosaic_0001>

<bundles_post_ra>
// kernel: tpu_custom_call.1
= control target key start
LH: loop header
LB: loop body
LE: loop exit
PB: predicated region body
PF: predicated region fallthrough
CT: control target
= control target key end

     0   :  { %s615_s9 = smov 0   ;;  %s755_s0 = inlined_call_operand.vmem [shape: f32[20,100], index: 0, kind: input, shape index: {}]   ;;  %s756_s1 = inlined_call_operand.vmem [shape: f32[384,100], index: 1, kind: input, shape index: {}]   ;;  %s757_s2 = inlined_call_operand.vmem [shape: f32[20,1], index: 2, kind: output, shape index: {}]  }
   0x1 LB: > { %s621_s10 = sadd.s32 4294967295, %s593_s9   ;;  %p435_p0 = scmp.ge.s32.totalorder %s593_s9, 1  ;;  %s593_s9 = sphi %s615_s9, %s12_s9  }
   0x2   : > { %p108_p1 = scmp.lt.s32.totalorder %s593_s9, 4 }
   0x4   : > { %p109_p2 = pnand %p435_p0, %p108_p1 }
   0x5   : > { %s436_s11 = sshll.u32 (!%p109_p2), %s621_s10, 4  ;;  %p438_p4 = scmp.ne.s32.totalorder (!%p109_p2), %s621_s10, 0 }
   0x6   : > { %112 = sbr.rel (%p109_p2) target bundleno = 742 (0x2e6), region = 28  ;;  %p126_p3 = scmp.lt.s32.totalorder (!%p109_p2), %s436_s11, 47 }
   0xb   : > { %s759_s11 = smov (!%p126_p3, %s436_s11), 47  ;;  %134 = sbr.rel (%p438_p4) target bundleno = 20 (0x14), region = 32 }
   0xc   : > { %s437_s12 = sshll.u32 %s759_s11, 3 }
   0xd   : > { %s629_s15 = scalar_lea.vmem %s756_s1, %s437_s12 }
  0x10   : > { %vm135_vm0 = vcmask 7168   ;;  %vm138_vm1 = vcmask 3072   ;;  %v595_v0 = vmov -inf   ;;  %v596_v1 = vmov 0.0  }
  0x11   : > { %136 = vst.msk [vmem:[#allocation2] sm:$0xff] %vm135_vm0, %v595_v0  ;;  %137 = vst.msk [vmem:[#allocation2 + $0x8] sm:$0xff] %vm135_vm0, %v595_v0 }
  0x12   : > { %139 = vst.msk [vmem:[#allocation2 + $0x10] sm:$0xf] %vm138_vm1, %v595_v0  ;;  %142 = vst.msk [vmem:[#allocation3 + $0x10] sm:$0xf] %vm138_vm1, %v596_v1 }
  0x13   : > { %140 = vst.msk [vmem:[#allocation3] sm:$0xff] %vm135_vm0, %v596_v1  ;;  %141 = vst.msk [vmem:[#allocation3 + $0x8] sm:$0xff] %vm135_vm0, %v596_v1 }
  0x14 PF: > { %v161_v2 = vld [vmem:[%s629_s15 + $0x78] sm:$0xff]  ;;  %vm162_vm2 = vcmask 818176   ;;  %v597_v3 = vmov 0.0   ;;  %v160_v4 = vld [vmem:[%s629_s15 + $0x70] sm:$0xff]  ;;  %vm598_vm3 = vmmov 0   ;;  %v159_v5 = vld [vmem:[%s629_s15 + $0x68] sm:$0xff]  ;;  %v300_v22 = vlaneseq }
  0x15   : > { %522 = vmatprep.subr.mxu1 %v597_v3  ;;  %481 = vmatprep.subr.mxu0 %v597_v3  ;;  %v158_v6 = vld [vmem:[%s629_s15 + $0x60] sm:$0xff]  ;;  %v157_v7 = vld [vmem:[%s629_s15 + $0x58] sm:$0xff]  ;;  %v156_v8 = vld [vmem:[%s629_s15 + $0x50] sm:$0xff]  ;;  %s458_s22 = sshll.u32 %s621_s10, 7  ;;  %vm318_vm5 = vcmask 1043456   ;;  %v599_v36 = vmov 0  }
  0x16   : > { %538 = vmatpush3.xpose.msk.msra.mxu1 %vm162_vm2, %v161_v2  ;;  %482 = vmatpush3.xpose.msk.msra.mxu0 %vm162_vm2, %v161_v2  ;;  %v155_v9 = vld [vmem:[%s629_s15 + $0x48] sm:$0xff]  ;;  %v154_v10 = vld [vmem:[%s629_s15 + $0x40] sm:$0xff]  ;;  %v153_v11 = vld [vmem:[%s629_s15 + $0x38] sm:$0xff]  ;;  %v301_v23 = vand.u32 127, %v300_v22  ;;  %v303_v24 = vstv %s458_s22  ;;  %vm374_vm6 = vcmask 7168   ;;  %vm377_vm7 = vcmask 3072  }
  0x17   : > { %523 = vmatprep.subr.mxu1 %v597_v3  ;;  %483 = vmatprep.subr.mxu0 %v597_v3  ;;  %v152_v12 = vld [vmem:[%s629_s15 + $0x30] sm:$0xff]  ;;  %v151_v13 = vld [vmem:[%s629_s15 + $0x28] sm:$0xff]  ;;  %v150_v14 = vld [vmem:[%s629_s15 + $0x20] sm:$0xff]  ;;  %p459_p5 = scmp.ne.s32.totalorder %s621_s10, 2 }
  0x18   : > { %516 = vmatprep.mubr.msk.f32.mxu1 %vm598_vm3, %v597_v3  ;;  %513 = vmatprep.mubr.msk.f32.mxu0 %vm598_vm3, %v597_v3  ;;  %v149_v15 = vld [vmem:[%s629_s15 + $0x18] sm:$0xff]  ;;  %v148_v16 = vld [vmem:[%s629_s15 + $0x10] sm:$0xff]  ;;  %v147_v17 = vld [vmem:[%s629_s15 + $0x8] sm:$0xff]  ;;  %v304_v25 = vadd.s32 %v303_v24, %v301_v23 }
  0x19   : > { %v146_v18 = vld [vmem:[%s629_s15] sm:$0xff]  ;;  %v144_v19 = vld [vmem:[%s755_s0 + $0x8] sm:$0xff]  ;;  %v145_v21 = vld [vmem:[%s755_s0 + $0x10] sm:$0xf]  ;;  %568 = vset.pattern.permute.xlu1 %v599_v36  ;;  %567 = vset.pattern.permute.xlu0 %v599_v36 }
  0x1a   : > { %539 = vmatpush3.xpose.msk.msra.mxu1 %vm162_vm2, %v160_v4  ;;  %484 = vmatpush3.xpose.msk.msra.mxu0 %vm162_vm2, %v160_v4  ;;  %v143_v20 = vld [vmem:[%s755_s0] sm:$0xff]  ;;  %vm305_vm4 = vcmp.lt.s32.totalorder %v304_v25, 300  ;;  %v312_v37 = vld [vmem:[#allocation2 + $0x8] sm:$0xff]  ;;  %v313_v41 = vld [vmem:[#allocation2 + $0x10] sm:$0xf] }
  0x1b   : > { %524 = vmatprep.subr.mxu1 %v597_v3  ;;  %485 = vmatprep.subr.mxu0 %v597_v3  ;;  %v311_v44 = vld [vmem:[#allocation2] sm:$0xff]  ;;  %v325_v4 = vld [vmem:[#allocation3] sm:$0xff] }
  0x1c   : > { %v326_v2 = vld [vmem:[#allocation3 + $0x8] sm:$0xff] }
  0x1e   : > { %540 = vmatpush3.xpose.msk.msra.mxu1 %vm162_vm2, %v159_v5  ;;  %486 = vmatpush3.xpose.msk.msra.mxu0 %vm162_vm2, %v159_v5 }
  0x1f   : > { %525 = vmatprep.subr.mxu1 %v597_v3  ;;  %487 = vmatprep.subr.mxu0 %v597_v3 }
  0x22   : > { %541 = vmatpush3.xpose.msk.msra.mxu1 %vm162_vm2, %v158_v6  ;;  %488 = vmatpush3.xpose.msk.msra.mxu0 %vm162_vm2, %v158_v6 }
  0x23   : > { %526 = vmatprep.subr.mxu1 %v597_v3  ;;  %489 = vmatprep.subr.mxu0 %v597_v3 }
  0x26   : > { %542 = vmatpush3.xpose.msk.msra.mxu1 %vm162_vm2, %v157_v7  ;;  %490 = vmatpush3.xpose.msk.msra.mxu0 %vm162_vm2, %v157_v7 }
  0x27   : > { %527 = vmatprep.subr.mxu1 %v597_v3  ;;  %491 = vmatprep.subr.mxu0 %v597_v3 }
  0x2a   : > { %543 = vmatpush3.xpose.msk.msra.mxu1 %vm162_vm2, %v156_v8  ;;  %492 = vmatpush3.xpose.msk.msra.mxu0 %vm162_vm2, %v156_v8 }
  0x2b   : > { %528 = vmatprep.subr.mxu1 %v597_v3  ;;  %493 = vmatprep.subr.mxu0 %v597_v3 }
  0x2e   : > { %544 = vmatpush3.xpose.msk.msra.mxu1 %vm162_vm2, %v155_v9  ;;  %494 = vmatpush3.xpose.msk.msra.mxu0 %vm162_vm2, %v155_v9 }
  0x2f   : > { %529 = vmatprep.subr.mxu1 %v597_v3  ;;  %495 = vmatprep.subr.mxu0 %v597_v3 }
  0x32   : > { %545 = vmatpush3.xpose.msk.msra.mxu1 %vm162_vm2, %v154_v10  ;;  %496 = vmatpush3.xpose.msk.msra.mxu0 %vm162_vm2, %v154_v10 }
  0x33   : > { %530 = vmatprep.subr.mxu1 %v597_v3  ;;  %497 = vmatprep.subr.mxu0 %v597_v3 }
  0x36   : > { %546 = vmatpush3.xpose.msk.msra.mxu1 %vm162_vm2, %v153_v11  ;;  %498 = vmatpush3.xpose.msk.msra.mxu0 %vm162_vm2, %v153_v11  ;;  %v327_v11 = vld [vmem:[#allocation3 + $0x10] sm:$0xf] }
  0x37   : > { %531 = vmatprep.subr.mxu1 %v597_v3  ;;  %499 = vmatprep.subr.mxu0 %v597_v3 }
  0x3a   : > { %547 = vmatpush3.xpose.msk.msra.mxu1 %vm162_vm2, %v152_v12  ;;  %500 = vmatpush3.xpose.msk.msra.mxu0 %vm162_vm2, %v152_v12 }
  0x3b   : > { %532 = vmatprep.subr.mxu1 %v597_v3  ;;  %501 = vmatprep.subr.mxu0 %v597_v3 }
  0x3e   : > { %548 = vmatpush3.xpose.msk.msra.mxu1 %vm162_vm2, %v151_v13  ;;  %502 = vmatpush3.xpose.msk.msra.mxu0 %vm162_vm2, %v151_v13 }
  0x3f   : > { %533 = vmatprep.subr.mxu1 %v597_v3  ;;  %503 = vmatprep.subr.mxu0 %v597_v3 }
  0x42   : > { %549 = vmatpush3.xpose.msk.msra.mxu1 %vm162_vm2, %v150_v14  ;;  %504 = vmatpush3.xpose.msk.msra.mxu0 %vm162_vm2, %v150_v14 }
  0x43   : > { %534 = vmatprep.subr.mxu1 %v597_v3  ;;  %505 = vmatprep.subr.mxu0 %v597_v3 }
  0x46   : > { %550 = vmatpush3.xpose.msk.msra.mxu1 %vm162_vm2, %v149_v15  ;;  %506 = vmatpush3.xpose.msk.msra.mxu0 %vm162_vm2, %v149_v15 }
  0x47   : > { %535 = vmatprep.subr.mxu1 %v597_v3  ;;  %507 = vmatprep.subr.mxu0 %v597_v3 }
  0x4a   : > { %551 = vmatpush3.xpose.msk.msra.mxu1 %vm162_vm2, %v148_v16  ;;  %508 = vmatpush3.xpose.msk.msra.mxu0 %vm162_vm2, %v148_v16 }
  0x4b   : > { %536 = vmatprep.subr.mxu1 %v597_v3  ;;  %509 = vmatprep.subr.mxu0 %v597_v3 }
  0x4e   : > { %552 = vmatpush3.xpose.msk.msra.mxu1 %vm162_vm2, %v147_v17  ;;  %510 = vmatpush3.xpose.msk.msra.mxu0 %vm162_vm2, %v147_v17 }
  0x4f   : > { %537 = vmatprep.subr.mxu1 %v597_v3  ;;  %511 = vmatprep.subr.mxu0 %v597_v3 }
  0x52   : > { %553 = vmatpush3.xpose.msk.msra.mxu1 %vm162_vm2, %v146_v18  ;;  %512 = vmatpush3.xpose.msk.msra.mxu0 %vm162_vm2, %v146_v18 }
  0x55   : > { %517 = vmatmul.mubr.msk.f32.vlgmr.msra.gmra.mxu1 %vm162_vm2, %v144_v19  ;;  %514 = vmatmul.mubr.msk.f32.vlgmr.msra.gmra.mxu0 %vm162_vm2, %v143_v20 }
  0x56   : > { %519 = vmatprep.mubr.msk.f32.mxu1 %vm598_vm3, %v597_v3 }
  0x59   : > { %520 = vmatmul.mubr.msk.f32.gmra.mxu1 %vm162_vm2, %v145_v21 }
 0x115   : > { %v291_v26 = vpop.f32.mrf.mxu1  ;;  %v286_v27 = vpop.f32.mrf.mxu0 }
 0x116   : > { %v309_v28 = vsel %vm305_vm4, %v291_v26, -inf  ;;  %v308_v35 = vsel %vm305_vm4, %v286_v27, -inf }
 0x117   : > { %316 = vmax.xlane.f32.xlu1 %v309_v28  ;;  %v518_v29 = vpop.f32.mrf.mxu1  ;;  %v515_v30 = vpop.f32.mrf.mxu0 }
 0x119   : > { %v296_v31 = vpop.f32.mrf.mxu1 }
 0x11a   : > { %v310_v32 = vsel %vm305_vm4, %v296_v31, -inf }
 0x11b   : > { %v521_v33 = vpop.f32.mrf.mxu1  ;;  %v319_v34 = vsel %vm318_vm5, %v310_v32, -inf }
 0x11c   : > { %320 = vmax.xlane.f32.xlu0 %v319_v34 }
 0x120   : > { %314 = vmax.xlane.f32.xlu0 %v308_v35 }
 0x1a0   : > { %v317_v38 = vpop.xlane.xlu1 %316 }
 0x1a1   : > { %v323_v39 = vmax.f32 %v312_v37, %v317_v38 }
 0x1a3   : > { %v329_v40 = vsub.f32 %v312_v37, %v323_v39  ;;  %380 = vst.msk [vmem:[#allocation2 + $0x8] sm:$0xff] %vm374_vm6, %v323_v39 }
 0x1a5   : > { %v321_v42 = vpop.xlane.xlu0 %320  ;;  %v333_v62 = vmul.f32 1.442695, %v329_v40 }
 0x1a6   : > { %v324_v43 = vmax.f32 %v313_v41, %v321_v42 }
 0x1a8   : > { %v330_v45 = vsub.f32 %v313_v41, %v324_v43  ;;  %381 = vst.msk [vmem:[#allocation2 + $0x10] sm:$0xf] %vm377_vm7, %v324_v43  ;;  %352 = vperm.xlu1 %568, %v324_v43  }
 0x1a9   : > { %v315_v46 = vpop.xlane.xlu0 %314 }
 0x1aa   : > { %v322_v47 = vmax.f32 %v311_v44, %v315_v46  ;;  %v335_v0 = vmul.f32 1.442695, %v330_v45 }
 0x1ac   : > { %v328_v48 = vsub.f32 %v311_v44, %v322_v47  ;;  %379 = vst.msk [vmem:[#allocation2] sm:$0xff] %vm374_vm6, %v322_v47  ;;  %347 = vperm.xlu1 %568, %v323_v39   ;;  %342 = vperm.xlu0 %567, %v322_v47  }
 0x1ae   : > { %v331_v63 = vmul.f32 1.442695, %v328_v48 }
 0x223   : > { %v353_v49 = vpop.permute.xlu1 %352 }
 0x224   : > { %v357_v50 = vsub.f32 %v310_v32, %v353_v49 }
 0x226   : > { %v362_v55 = vmul.f32 1.442695, %v357_v50 }
 0x227   : > { %v348_v51 = vpop.permute.xlu1 %347  ;;  %v343_v52 = vpop.permute.xlu0 %342 }
 0x228   : > { %v356_v53 = vsub.f32 %v309_v28, %v348_v51  ;;  %v355_v54 = vsub.f32 %v308_v35, %v343_v52 }
 0x22a   : > { %v360_v56 = vmul.f32 1.442695, %v356_v53  ;;  %v358_v57 = vmul.f32 1.442695, %v355_v54 }
 0x22c   : > { %569 = vpow2.f32 %v360_v56 }
 0x22d   : > { %571 = vpow2.f32 %v358_v57 }
 0x22e   : > { %573 = vpow2.f32 %v362_v55 }
 0x22f   : > { %575 = vpow2.f32 %v333_v62 }
 0x230   : > { %577 = vpow2.f32 %v331_v63 }
 0x231   : > { %579 = vpow2.f32 %v335_v0 }
 0x239   : > { %v570_v58 = vpop.eup %569 }
 0x23a   : > { %v572_v59 = vpop.eup %571  ;;  %366 = vadd.xlane.f32.xlu0 %v570_v58 }
 0x23b   : > { %v574_v60 = vpop.eup %573  ;;  %364 = vadd.xlane.f32.xlu1 %v572_v59 }
 0x23c   : > { %v368_v61 = vsel %vm318_vm5, %v574_v60, 0.0  ;;  %v576_v1 = vpop.eup %575 }
 0x23d   : > { %v578_v3 = vpop.eup %577  ;;  %v338_v5 = vmul.f32 %v576_v1, %v326_v2 }
 0x23e   : > { %v337_v6 = vmul.f32 %v578_v3, %v325_v4  ;;  %v580_v8 = vpop.eup %579 }
 0x23f   : > { %369 = vadd.xlane.f32.xlu1 %v368_v61  ;;  %v339_v13 = vmul.f32 %v580_v8, %v327_v11 }
 0x2c3   : > { %v367_v7 = vpop.xlane.xlu0 %366 }
 0x2c4   : > { %v365_v9 = vpop.xlane.xlu1 %364  ;;  %v372_v10 = vadd.f32 %v367_v7, %v338_v5 }
 0x2c5   : > { %v371_v12 = vadd.f32 %v365_v9, %v337_v6 }
 0x2c6   : > { %376 = vst.msk [vmem:[#allocation3 + $0x8] sm:$0xff] %vm374_vm6, %v372_v10 }
 0x2c7   : > { %375 = vst.msk [vmem:[#allocation3] sm:$0xff] %vm374_vm6, %v371_v12  ;;  %385 = sbr.rel (%p459_p5) target bundleno = 742 (0x2e6), region = 36 }
 0x2c8   : > { %v370_v14 = vpop.xlane.xlu1 %369 }
 0x2c9   : > { %v373_v15 = vadd.f32 %v370_v14, %v339_v13 }
 0x2cb   : > { %378 = vst.msk [vmem:[#allocation3 + $0x10] sm:$0xf] %vm377_vm7, %v373_v15 }
 0x2cc   : > { %v386_v20 = vld [vmem:[#allocation2] sm:$0xff]  ;;  %v387_v23 = vld [vmem:[#allocation2 + $0x8] sm:$0xff]  ;;  %v388_v26 = vld [vmem:[#allocation2 + $0x10] sm:$0xf] }
 0x2cd   : > { %v390_v17 = vld [vmem:[#allocation3 + $0x8] sm:$0xff] }
 0x2ce   : > { %v389_v16 = vld [vmem:[#allocation3] sm:$0xff] }
 0x2cf   : > { %581 = vlog2.f32 %v389_v16 }
 0x2d0   : > { %583 = vlog2.f32 %v390_v17 }
 0x2d2   : > { %v391_v18 = vld [vmem:[#allocation3 + $0x10] sm:$0xf] }
 0x2d3   : > { %585 = vlog2.f32 %v391_v18 }
 0x2dc   : > { %v582_v19 = vpop.eup %581 }
 0x2dd   : > { %v584_v21 = vpop.eup %583  ;;  %v393_v22 = vmul.f32 0.6931472, %v582_v19 }
 0x2de   : > { %v395_v25 = vmul.f32 0.6931472, %v584_v21 }
 0x2df   : > { %v398_v27 = vadd.f32 %v393_v22, %v386_v20 }
 0x2e0   : > { %v586_v24 = vpop.eup %585  ;;  %v399_v29 = vadd.f32 %v395_v25, %v387_v23 }
 0x2e1   : > { %v397_v28 = vmul.f32 0.6931472, %v586_v24  ;;  %401 = vst.msk [vmem:[%s757_s2] sm:$0xff] %vm374_vm6, %v398_v27 }
 0x2e2   : > { %402 = vst.msk [vmem:[%s757_s2 + $0x8] sm:$0xff] %vm374_vm6, %v399_v29 }
 0x2e3   : > { %v400_v30 = vadd.f32 %v397_v28, %v388_v26 }
 0x2e5   : > { %403 = vst.msk [vmem:[%s757_s2 + $0x10] sm:$0xf] %vm377_vm7, %v400_v30 }
 0x2e6 PF: > { %s12_s9 = sadd.s32 1, %s593_s9  }
 0x2e7   : > { %p9_p6 = scmp.ge.s32.totalorder %s12_s9, 5  }
 0x2e9   :  { %11 = sbr.rel (!%p9_p6) target bundleno = 1 (0x1), region = 62 }

</bundles_post_ra>
